<compile_context>
chip_gen: v7x
topology: tpu7x:2x2x1
jax: 0.10.0
libtpu: 0.0.40
codegen_flags: <defaults>
</compile_context>

<pallas_src>
import math
from functools import partial

import jax
import jax.numpy as jnp
from jax.experimental import pallas as pl
from jax.experimental.pallas import tpu as pltpu


def _patch_embed_kernel(x_ref, w_ref, pe_ref, o_ref):
    # x_ref : (TN, TP, K)   TN rows x TP patches of length K = patch_len
    # w_ref : (K, Dp)       value-embedding weight (transposed, lane-padded)
    # pe_ref: (TP, Dp)      positional-embedding tile (keyed only on p -> resident)
    # o_ref : (TN, TP, Dp)
    tn, tp, k = x_ref.shape
    dp = w_ref.shape[1]
    # One MXU matmul with M = TN*TP (TP is a multiple of 8 so the merge of the
    # two leading dims is a pure sublane-tile re-indexing, no relayout).
    x2 = x_ref[...].reshape(tn * tp, k)
    acc = jnp.dot(x2, w_ref[...], preferred_element_type=jnp.float32)
    acc = acc.reshape(tn, tp, dp) + pe_ref[...].astype(jnp.float32)[None, :, :]
    o_ref[...] = acc.astype(o_ref.dtype)


def _positional_embedding(num_pos, d_model):
    # Matches PositionalEmbedding: pe[:, 0::2] = sin, pe[:, 1::2] = cos.
    position = jnp.arange(num_pos, dtype=jnp.float32)[:, None]
    div_term = jnp.exp(jnp.arange(0, d_model, 2, dtype=jnp.float32)
                       * -(math.log(10000.0) / d_model))
    pe = jnp.zeros((num_pos, d_model), dtype=jnp.float32)
    pe = pe.at[:, 0::2].set(jnp.sin(position * div_term))
    pe = pe.at[:, 1::2].set(jnp.cos(position * div_term))
    return pe


def _round_up(v, m):
    return ((v + m - 1) // m) * m


@partial(jax.jit, static_argnames=("patch_len", "stride", "tile_n", "tile_p"))
def _patch_embedding_impl(x, weight, *, patch_len, stride, tile_n, tile_p):
    B, n_vars, L = x.shape
    D, K = weight.shape
    assert K == patch_len

    # ReplicationPad1d((0, stride)): replicate the last time step `stride` times.
    x_pad = jnp.concatenate(
        [x, jnp.repeat(x[:, :, -1:], stride, axis=-1)], axis=-1)
    L_pad = L + stride
    P = (L_pad - patch_len) // stride + 1

    # unfold(dimension=-1, size=patch_len, step=stride). Kept inside the same
    # jit as the pallas_call so XLA can fuse the gather with the pad.
    idx = jnp.arange(P)[:, None] * stride + jnp.arange(patch_len)[None, :]
    patches = x_pad[:, :, idx].reshape(B * n_vars, P, patch_len)
    N = B * n_vars

    # Lane-dense output: pad d_model to a multiple of 128.
    Dp = _round_up(D, 128)
    w_t = jnp.transpose(weight, (1, 0)).astype(x.dtype)   # (patch_len, D)
    pe = _positional_embedding(P, D)                       # (P, D), f32
    if Dp != D:
        w_t = jnp.pad(w_t, ((0, 0), (0, Dp - D)))
        pe = jnp.pad(pe, ((0, 0), (0, Dp - D)))

    # Tile the patch axis (multiple of 8) and the row axis.
    TP = _round_up(min(tile_p, _round_up(P, 8)), 8)
    n_pt = pl.cdiv(P, TP)
    Pp = n_pt * TP
    TN = min(tile_n, N)
    n_nt = pl.cdiv(N, TN)
    Np = n_nt * TN
    if Pp != P or Np != N:
        patches = jnp.pad(patches, ((0, Np - N), (0, Pp - P), (0, 0)))
    if Pp != P:
        pe = jnp.pad(pe, ((0, Pp - P), (0, 0)))

    out = pl.pallas_call(
        _patch_embed_kernel,
        out_shape=jax.ShapeDtypeStruct((Np, Pp, Dp), x.dtype),
        grid_spec=pltpu.PrefetchScalarGridSpec(
            num_scalar_prefetch=0,
            # p is the slow axis: the pe tile (keyed on p) and the weight
            # (constant index_map) are not re-fetched while n varies.
            grid=(n_pt, n_nt),
            in_specs=[
                pl.BlockSpec((TN, TP, patch_len), lambda p, n: (n, p, 0)),
                pl.BlockSpec((patch_len, Dp), lambda p, n: (0, 0)),
                pl.BlockSpec((TP, Dp), lambda p, n: (p, 0)),
            ],
            out_specs=pl.BlockSpec((TN, TP, Dp), lambda p, n: (n, p, 0)),
        ),
        compiler_params=pltpu.CompilerParams(
            dimension_semantics=("parallel", "parallel")),
    )(patches, w_t, pe)

    # Slice away padding only when padding was actually applied.
    if Pp != P or Dp != D or Np != N:
        out = out[:N, :P, :D]
    return out


def patch_embedding(x, weight, *, patch_len, stride, tile_n=8, tile_p=256):
    """x: (B, n_vars, L); weight: (d_model, patch_len) — nn.Linear layout.

    Returns (out, n_vars) with out: (B * n_vars, num_patches, d_model).
    """
    # TODO(synk): nn.Dropout is treated as identity (inference-mode forward).
    out = _patch_embedding_impl(x, weight, patch_len=patch_len, stride=stride,
                                tile_n=tile_n, tile_p=tile_p)
    return out, x.shape[1]


def _reference(x, weight, patch_len, stride):
    # Pure-JAX mirror of the PyTorch forward for a correctness check.
    B, n_vars, L = x.shape
    D = weight.shape[0]
    x_pad = jnp.concatenate(
        [x, jnp.repeat(x[:, :, -1:], stride, axis=-1)], axis=-1)
    P = (x_pad.shape[-1] - patch_len) // stride + 1
    idx = jnp.arange(P)[:, None] * stride + jnp.arange(patch_len)[None, :]
    patches = x_pad[:, :, idx].reshape(B * n_vars, P, patch_len)
    pe = _positional_embedding(P, D)
    return jnp.einsum("npk,dk->npd", patches, weight) + pe[None]


if __name__ == "__main__":
    B, N_VARS, SEQ_LEN = 2, 4, 16
    PATCH_LEN, STRIDE, D_MODEL = 8, 4, 32

    key = jax.random.PRNGKey(0)
    kx, kw = jax.random.split(key)
    x = jax.random.normal(kx, (B, N_VARS, SEQ_LEN), dtype=jnp.float32)
    # nn.Linear(patch_len, d_model, bias=False) weight layout: (d_model, patch_len)
    bound = 1.0 / math.sqrt(PATCH_LEN)
    weight = jax.random.uniform(kw, (D_MODEL, PATCH_LEN), dtype=jnp.float32,
                                minval=-bound, maxval=bound)

    out, n_vars = patch_embedding(x, weight, patch_len=PATCH_LEN, stride=STRIDE)
    out = jax.block_until_ready(out)

    ref = _reference(x, weight, PATCH_LEN, STRIDE)
    num_patches = (SEQ_LEN + STRIDE - PATCH_LEN) // STRIDE + 1
    assert n_vars == N_VARS
    assert out.shape == (B * N_VARS, num_patches, D_MODEL)
    assert jnp.allclose(out, ref, atol=1e-5, rtol=1e-5), "mismatch vs reference"

    print("KERNEL_OK")
</pallas_src>

<mosaic_0001>
module attributes {stable_mosaic.version = 11 : i64} {
  func.func @_patch_embed_kernel(%arg0: i32, %arg1: i32, %arg2: memref<8x8x8xf32, #tpu.memory_space<vmem>>, %arg3: memref<8x128xf32, #tpu.memory_space<vmem>>, %arg4: memref<8x128xf32, #tpu.memory_space<vmem>>, %arg5: memref<8x8x128xf32, #tpu.memory_space<vmem>>) attributes {dimension_semantics = [#tpu.dimension_semantics<parallel>, #tpu.dimension_semantics<parallel>], iteration_bounds = array<i64: 1, 1>, scalar_prefetch = 0 : i64, scratch_operands = 0 : i64, tpu.core_type = #tpu.core_type<tc>, window_params = [{transform_indices = @transform_0, window_bounds = array<i64: 8, 8, 8>}, {pipeline_mode = #tpu.pipeline_mode<synchronous>, transform_indices = @transform_1, window_bounds = array<i64: 8, 128>}, {transform_indices = @transform_2, window_bounds = array<i64: 8, 128>}, {transform_indices = @transform_3, window_bounds = array<i64: 8, 8, 128>}]} {
    %c0 = arith.constant 0 : index
    %c0_0 = arith.constant 0 : index
    %c0_1 = arith.constant 0 : index
    %0 = vector.load %arg2[%c0, %c0_0, %c0_1] : memref<8x8x8xf32, #tpu.memory_space<vmem>>, vector<8x8x8xf32>
    %1 = vector.shape_cast %0 : vector<8x8x8xf32> to vector<64x8xf32>
    %c0_2 = arith.constant 0 : index
    %c0_3 = arith.constant 0 : index
    %2 = vector.load %arg3[%c0_2, %c0_3] : memref<8x128xf32, #tpu.memory_space<vmem>>, vector<8x128xf32>
    %cst = arith.constant dense<0.000000e+00> : vector<64x128xf32>
    %3 = tpu.matmul %1, %2, %cst {dimension_numbers = #tpu.dot_dimension_numbers<[1], [0], [0], [1], [0, 0, 1, 1], [], []>} : vector<64x8xf32>, vector<8x128xf32>, vector<64x128xf32> -> vector<64x128xf32>
    %4 = vector.shape_cast %3 : vector<64x128xf32> to vector<8x8x128xf32>
    %c0_4 = arith.constant 0 : index
    %c0_5 = arith.constant 0 : index
    %5 = vector.load %arg4[%c0_4, %c0_5] : memref<8x128xf32, #tpu.memory_space<vmem>>, vector<8x128xf32>
    %6 = vector.shape_cast %5 : vector<8x128xf32> to vector<1x8x128xf32>
    %7 = vector.broadcast %6 : vector<1x8x128xf32> to vector<8x8x128xf32>
    %8 = arith.addf %4, %7 : vector<8x8x128xf32>
    %c0_6 = arith.constant 0 : index
    %c0_7 = arith.constant 0 : index
    %c0_8 = arith.constant 0 : index
    %9 = vector.load %arg5[%c0_6, %c0_7, %c0_8] : memref<8x8x128xf32, #tpu.memory_space<vmem>>, vector<8x8x128xf32>
    tpu.vector_store %arg5[%c0_6, %c0_7, %c0_8], %8 {strides = array<i32>} : memref<8x8x128xf32, #tpu.memory_space<vmem>>, vector<8x8x128xf32>,
    return
  }
  func.func @transform_0(%arg0: i32, %arg1: i32) -> (i32, i32, i32) {
    %c0_i32 = arith.constant 0 : i32
    %c0_i32_0 = arith.constant 0 : i32
    return %arg1, %arg0, %c0_i32 : i32, i32, i32
  }
  func.func @transform_1(%arg0: i32, %arg1: i32) -> (i32, i32) {
    %c0_i32 = arith.constant 0 : i32
    %c0_i32_0 = arith.constant 0 : i32
    %c0_i32_1 = arith.constant 0 : i32
    return %c0_i32, %c0_i32_0 : i32, i32
  }
  func.func @transform_2(%arg0: i32, %arg1: i32) -> (i32, i32) {
    %c0_i32 = arith.constant 0 : i32
    %c0_i32_0 = arith.constant 0 : i32
    return %arg0, %c0_i32 : i32, i32
  }
  func.func @transform_3(%arg0: i32, %arg1: i32) -> (i32, i32, i32) {
    %c0_i32 = arith.constant 0 : i32
    %c0_i32_0 = arith.constant 0 : i32
    return %arg1, %arg0, %c0_i32 : i32, i32, i32
  }
}

</mosaic_0001>

<bundles_post_ra>
// kernel: _patch_embedding_impl.1
= control target key start
LH: loop header
LB: loop body
LE: loop exit
PB: predicated region body
PF: predicated region fallthrough
CT: control target
= control target key end

     0   :  { %vm23_vm0 = vcmask 64512   ;;  %s289_s1 = inlined_call_operand.vmem [shape: f32[8,128], index: 1, kind: input, shape index: {}]   ;;  %s290_s0 = inlined_call_operand.vmem [shape: f32[8,8,8], index: 0, kind: input, shape index: {}]   ;;  %s291_s2 = inlined_call_operand.vmem [shape: f32[8,128], index: 2, kind: input, shape index: {}]   ;;  %s292_s3 = inlined_call_operand.vmem [shape: f32[8,8,128], index: 3, kind: output, shape index: {}]  }
   0x1   :  { %v22_v0 = vld [vmem:[%s289_s1] sm:$0xff]  ;;  %v15_v3 = vld [vmem:[%s290_s0 + $0x8] sm:$0xff]  ;;  %v16_v5 = vld [vmem:[%s290_s0 + $0x10] sm:$0xff] }
   0x2   :  { %v14_v1 = vld [vmem:[%s290_s0] sm:$0xff]  ;;  %191 = vmatprep.subr.mxu0 %v22_v0  ;;  %205 = vmatprep.subr.mxu1 %v22_v0  ;;  %v19_v4 = vld [vmem:[%s290_s0 + $0x28] sm:$0xff]  ;;  %v20_v6 = vld [vmem:[%s290_s0 + $0x30] sm:$0xff] }
   0x3   :  { %v18_v2 = vld [vmem:[%s290_s0 + $0x20] sm:$0xff]  ;;  %192 = vmatpush3.msra.mxu0 %v22_v0  ;;  %206 = vmatpush3.msra.mxu1 %v22_v0  ;;  %v17_v7 = vld [vmem:[%s290_s0 + $0x18] sm:$0xff] }
   0x4   :  { %193 = vmatprep.mubr.msk.f32.mxu0 %vm23_vm0, %v14_v1  ;;  %199 = vmatprep.mubr.msk.f32.mxu1 %vm23_vm0, %v18_v2  ;;  %v21_v8 = vld [vmem:[%s290_s0 + $0x38] sm:$0xff]  ;;  %v153_v9 = vld [vmem:[%s291_s2] sm:$0xff] }
   0x5   :  { %194 = vmatmul.mubr.msk.f32.vlgmr.msra.gmra.mrb[0].mxu0 %vm23_vm0, %v15_v3  ;;  %200 = vmatmul.mubr.msk.f32.vlgmr.msra.gmra.mrb[0].mxu1 %vm23_vm0, %v19_v4 }
   0x6   :  { %196 = vmatprep.mubr.msk.f32.mxu0 %vm23_vm0, %v16_v5  ;;  %202 = vmatprep.mubr.msk.f32.mxu1 %vm23_vm0, %v20_v6 }
   0x9   :  { %197 = vmatmul.mubr.msk.f32.gmra.mrb[2].mxu0 %vm23_vm0, %v17_v7  ;;  %203 = vmatmul.mubr.msk.f32.gmra.mrb[2].mxu1 %vm23_vm0, %v21_v8 }
  0xd8   :  { %v195_v10 = vpop.f32.mrb[0].mxu0  ;;  %v201_v11 = vpop.f32.mrb[0].mxu1 }
  0xd9   :  { %v155_v12 = vadd.f32 %v195_v10, %v153_v9  ;;  %v159_v13 = vadd.f32 %v201_v11, %v153_v9  ;;  %v114_v14 = vpop.f32.mrb[1].mxu0  ;;  %v134_v15 = vpop.f32.mrb[1].mxu1 }
  0xda   :  { %v154_v16 = vadd.f32 %v153_v9, %v114_v14  ;;  %v158_v17 = vadd.f32 %v153_v9, %v134_v15 }
  0xdb   :  { %163 = vst [vmem:[%s292_s3 + $0x8] sm:$0xff] %v155_v12  ;;  %167 = vst [vmem:[%s292_s3 + $0x28] sm:$0xff] %v159_v13 }
  0xdc   :  { %162 = vst [vmem:[%s292_s3] sm:$0xff] %v154_v16  ;;  %166 = vst [vmem:[%s292_s3 + $0x20] sm:$0xff] %v158_v17  ;;  %v198_v18 = vpop.f32.mrb[2].mxu0  ;;  %v204_v19 = vpop.f32.mrb[2].mxu1 }
  0xdd   :  { %v157_v20 = vadd.f32 %v198_v18, %v153_v9  ;;  %v161_v21 = vadd.f32 %v204_v19, %v153_v9  ;;  %v124_v22 = vpop.f32.mrb[3].mxu0  ;;  %v144_v23 = vpop.f32.mrb[3].mxu1 }
  0xde   :  { %v156_v24 = vadd.f32 %v153_v9, %v124_v22  ;;  %v160_v25 = vadd.f32 %v153_v9, %v144_v23 }
  0xdf   :  { %165 = vst [vmem:[%s292_s3 + $0x18] sm:$0xff] %v157_v20  ;;  %169 = vst [vmem:[%s292_s3 + $0x38] sm:$0xff] %v161_v21 }
  0xe0   :  { %164 = vst [vmem:[%s292_s3 + $0x10] sm:$0xff] %v156_v24  ;;  %168 = vst [vmem:[%s292_s3 + $0x30] sm:$0xff] %v160_v25 }

</bundles_post_ra>
